<compile_context>
chip_gen: v6e
topology: v6e:2x2x1
jax: 0.10.0
libtpu: 0.0.40
codegen_flags: <defaults>
</compile_context>

<pallas_src>
import functools

import jax
import jax.numpy as jnp
from jax.experimental import pallas as pl
from jax.experimental.pallas import tpu as pltpu

NEG_PAD = -1e30    # bias for padded vocab lanes; exp() underflows to exactly 0.
LANE = 128         # TPU lane width; minor dims padded to a multiple of this.
MAX_TILE_V = 2048  # vocab-tile width for the output projection (multiple of 128).


def _round_up(x, m):
    return (x + m - 1) // m * m


def _vocab_tiling(vocab_size):
    tile_v = min(MAX_TILE_V, _round_up(vocab_size, LANE))
    vp = _round_up(vocab_size, tile_v)
    return tile_v, vp, vp // tile_v


def decoder_kernel(tok_ref,        # SMEM scalar prefetch (consumed by embedding index_map)
                   x_emb_ref,      # (1, Hp)   bf16  gathered embedding row (lead dim squeezed)
                   h_ref,          # (1, Hp)   f32   previous hidden state (lane padded)
                   w_i_ref,        # (Hp, 3Hp) bf16  [Wir | Wiz | Win], gates lane-aligned at 0/Hp/2Hp
                   w_h_ref,        # (Hp, 3Hp) bf16  [Whr | Whz | Whn]
                   b_ref,          # (4, Hp)   f32   [bir+bhr, biz+bhz, bin, bhn]
                   w_out_ref,      # (Hp, TV)  bf16  output-projection tile (grid axis 0 over vocab)
                   b_out_ref,      # (1, TV)   f32   output-bias tile (pad lanes = NEG_PAD)
                   logp_ref,       # out (nvt, 1, TV) f32  resident across the grid
                   h_out_ref,      # out (1, Hp) f32
                   h_sc,           # scratch (1, Hp) f32 : h' kept resident across vocab tiles
                   m_sc,           # scratch (1, 1)  f32 : running log-softmax max
                   s_sc):          # scratch (1, 1)  f32 : running sum(exp(logits - m))
    del tok_ref  # the gather already happened via the embedding BlockSpec index_map
    j = pl.program_id(0)
    nvt = pl.num_programs(0)
    Hp = h_ref.shape[-1]
    wdt = w_i_ref.dtype

    # ---- GRU cell: computed once (first vocab tile); h' stays resident in VMEM.
    @pl.when(j == 0)
    def _():
        # relu(embedding(token)); elementwise math stays f32 (v5e has no bf16 VPU/EUP).
        x = jnp.maximum(x_emb_ref[...].astype(jnp.float32), 0.0)          # (1, Hp)
        h = h_ref[...]                                                     # (1, Hp)

        # Two fused gate matmuls on the MXU, f32 accumulation.
        gi = jnp.dot(x.astype(wdt), w_i_ref[...],
                     preferred_element_type=jnp.float32)                   # (1, 3Hp)
        gh = jnp.dot(h.astype(wdt), w_h_ref[...],
                     preferred_element_type=jnp.float32)                   # (1, 3Hp)

        b = b_ref[...]                                                     # (4, Hp)
        r = jax.nn.sigmoid(gi[:, 0:Hp] + gh[:, 0:Hp] + b[0:1, :])
        z = jax.nn.sigmoid(gi[:, Hp:2 * Hp] + gh[:, Hp:2 * Hp] + b[1:2, :])
        n = jnp.tanh(gi[:, 2 * Hp:] + b[2:3, :] + r * (gh[:, 2 * Hp:] + b[3:4, :]))
        h_new = (1.0 - z) * n + z * h                                      # (1, Hp) f32

        h_sc[...] = h_new
        h_out_ref[...] = h_new            # lane-dense (Hp >= 128) single store
        m_sc[...] = jnp.full_like(m_sc, -jnp.inf)
        s_sc[...] = jnp.zeros_like(s_sc)

    # ---- Output projection, one vocab tile per grid step (pipelined w_out DMA),
    #      with online log-softmax statistics.
    h_new = h_sc[...]
    logits = jnp.dot(h_new.astype(wdt), w_out_ref[...],
                     preferred_element_type=jnp.float32) + b_out_ref[...]  # (1, TV)
    logp_ref[j] = logits                  # unnormalized; fixed up on the last tile

    m_prev = m_sc[...]
    m_new = jnp.maximum(m_prev, jnp.max(logits, axis=-1, keepdims=True))
    s_sc[...] = (s_sc[...] * jnp.exp(m_prev - m_new)
                 + jnp.sum(jnp.exp(logits - m_new), axis=-1, keepdims=True))
    m_sc[...] = m_new

    @pl.when(j == nvt - 1)
    def _():
        # Numerically-stable normalization over the whole (resident) vocab block.
        logp_ref[...] = logp_ref[...] - m_sc[...] - jnp.log(s_sc[...])


def prepare_params(p, weight_dtype=jnp.bfloat16):
    """Pack the PyTorch-layout f32 params into the fused / lane-padded kernel layout."""
    V, H = p["emb"].shape
    Hp = _round_up(H, LANE)
    _, Vp, _ = _vocab_tiling(V)

    def pad_mat(w):     # (H, H) -> (Hp, Hp), zero pad
        return jnp.zeros((Hp, Hp), jnp.float32).at[:H, :H].set(w)

    def pad_bias(b):    # (1, H) -> (1, Hp), zero pad
        return jnp.zeros((1, Hp), jnp.float32).at[:, :H].set(b)

    w_i = jnp.concatenate([pad_mat(p["w_ir"]), pad_mat(p["w_iz"]), pad_mat(p["w_in"])], axis=1)
    w_h = jnp.concatenate([pad_mat(p["w_hr"]), pad_mat(p["w_hz"]), pad_mat(p["w_hn"])], axis=1)
    b = jnp.concatenate([pad_bias(p["b_ir"] + p["b_hr"]),
                         pad_bias(p["b_iz"] + p["b_hz"]),
                         pad_bias(p["b_in"]),
                         pad_bias(p["b_hn"])], axis=0)                      # (4, Hp) f32

    emb = jnp.zeros((V, 1, Hp), jnp.float32).at[:, 0, :H].set(p["emb"])
    w_out = jnp.zeros((Hp, Vp), jnp.float32).at[:H, :V].set(p["w_out"])
    b_out = jnp.full((1, Vp), NEG_PAD, jnp.float32).at[:, :V].set(p["b_out"])

    return {
        "emb":   emb.astype(weight_dtype),     # (V, 1, Hp)
        "w_i":   w_i.astype(weight_dtype),     # (Hp, 3Hp)
        "w_h":   w_h.astype(weight_dtype),     # (Hp, 3Hp)
        "b":     b,                            # (4, Hp)  f32
        "w_out": w_out.astype(weight_dtype),   # (Hp, Vp)
        "b_out": b_out,                        # (1, Vp)  f32
    }


@functools.partial(jax.jit, static_argnames=("vocab_size",))
def decoder_forward(token, hidden, kp, *, vocab_size):
    """token: int (1,) array; hidden: (1, H) f32; kp: prepare_params() output."""
    V = vocab_size
    Vrows, _, Hp = kp["emb"].shape
    H = hidden.shape[-1]
    TILE_V, Vp, nvt = _vocab_tiling(V)
    assert kp["w_out"].shape == (Hp, Vp)

    # Clamp the token id: the embedding gather has no runtime bounds check.
    tok = jnp.clip(token.astype(jnp.int32).reshape(1), 0, Vrows - 1)
    # Lane-pad the hidden state (pad lanes stay exactly 0 through the GRU math).
    h_pad = jnp.zeros((1, Hp), jnp.float32).at[:, :H].set(hidden.astype(jnp.float32))

    def fixed(shape):
        # whole-array block, constant index -> DMA'd once, resident across the grid
        return pl.BlockSpec(shape, lambda j, tok_ref: (0,) * len(shape))

    in_specs = [
        # Gather only the needed embedding row via the prefetched token id; the
        # leading unit dim is squeezed so the kernel sees a plain (1, Hp) row.
        pl.BlockSpec((None, 1, Hp), lambda j, tok_ref: (tok_ref[0], 0, 0)),
        fixed((1, Hp)),            # hidden
        fixed((Hp, 3 * Hp)),       # fused input-gate weights
        fixed((Hp, 3 * Hp)),       # fused hidden-gate weights
        fixed((4, Hp)),            # packed biases
        pl.BlockSpec((Hp, TILE_V), lambda j, tok_ref: (0, j)),   # w_out tile (pipelined)
        pl.BlockSpec((1, TILE_V), lambda j, tok_ref: (0, j)),    # b_out tile (pipelined)
    ]
    out_specs = (fixed((nvt, 1, TILE_V)),   # logit tiles, resident, written back once
                 fixed((1, Hp)))            # h'
    out_shape = (jax.ShapeDtypeStruct((nvt, 1, TILE_V), jnp.float32),
                 jax.ShapeDtypeStruct((1, Hp), jnp.float32))

    grid_spec = pltpu.PrefetchScalarGridSpec(
        num_scalar_prefetch=1,
        grid=(nvt,),
        in_specs=in_specs,
        out_specs=out_specs,
        scratch_shapes=[pltpu.VMEM((1, Hp), jnp.float32),   # resident h'
                        pltpu.VMEM((1, 1), jnp.float32),    # running max
                        pltpu.VMEM((1, 1), jnp.float32)],   # running sum(exp)
    )

    cost = pl.CostEstimate(
        flops=2 * (2 * Hp * 3 * Hp) + 2 * Hp * Vp + 32 * Hp + 8 * Vp,
        transcendentals=3 * Hp + Vp,
        bytes_accessed=(Hp * 2 + Hp * 4 + 2 * (Hp * 3 * Hp * 2) + 4 * Hp * 4
                        + Hp * Vp * 2 + Vp * 4 + Vp * 4 + Hp * 4),
    )

    # Scoped-VMEM budget: double-buffered inputs + resident outputs/scratch + headroom.
    vmem_needed = (2 * (Hp * 2 + Hp * 4 + 2 * (Hp * 3 * Hp * 2) + 4 * Hp * 4
                        + Hp * TILE_V * 2 + TILE_V * 4)
                   + nvt * 8 * TILE_V * 4 + 8 * Hp * 4          # outputs (sublane-padded)
                   + 8 * Hp * 4 + 2 * 8 * LANE * 4)             # scratch
    vmem_limit = int(min(64 * 2 ** 20, vmem_needed + 16 * 2 ** 20))

    logp_tiles, h_new = pl.pallas_call(
        decoder_kernel,
        out_shape=out_shape,
        grid_spec=grid_spec,
        compiler_params=pltpu.CompilerParams(
            dimension_semantics=("arbitrary",),   # scratch carry across vocab tiles
            vmem_limit_bytes=vmem_limit),
        cost_estimate=cost,
    )(tok, kp["emb"], h_pad, kp["w_i"], kp["w_h"], kp["b"],
      kp["w_out"], kp["b_out"])

    # Layout plumbing only: (nvt, 1, TILE_V) -> (1, Vp), then drop pad lanes.
    logp = logp_tiles.reshape(1, nvt * TILE_V)[:, :V]
    return logp, h_new[:, :H]


def init_params(key, hidden_size, output_size):
    H, V = hidden_size, output_size
    ks = jax.random.split(key, 16)
    bound = 1.0 / jnp.sqrt(jnp.float32(H))

    def u(k, shape):
        return jax.random.uniform(k, shape, jnp.float32, -bound, bound)

    return {
        "emb":   jax.random.normal(ks[0], (V, H), jnp.float32),
        "w_ir":  u(ks[1], (H, H)), "w_iz": u(ks[2], (H, H)), "w_in": u(ks[3], (H, H)),
        "w_hr":  u(ks[4], (H, H)), "w_hz": u(ks[5], (H, H)), "w_hn": u(ks[6], (H, H)),
        "b_ir":  u(ks[7], (1, H)), "b_iz": u(ks[8], (1, H)), "b_in": u(ks[9], (1, H)),
        "b_hr":  u(ks[10], (1, H)), "b_hz": u(ks[11], (1, H)), "b_hn": u(ks[12], (1, H)),
        "w_out": u(ks[13], (H, V)),
        "b_out": u(ks[14], (1, V)),
    }


def reference_forward(token, hidden, p):
    """Plain-JAX f32 reference mirroring the PyTorch forward exactly."""
    x = p["emb"][token[0]][None, :]
    x = jnp.maximum(x, 0.0)
    h = hidden
    r = jax.nn.sigmoid(x @ p["w_ir"] + p["b_ir"] + h @ p["w_hr"] + p["b_hr"])
    z = jax.nn.sigmoid(x @ p["w_iz"] + p["b_iz"] + h @ p["w_hz"] + p["b_hz"])
    n = jnp.tanh(x @ p["w_in"] + p["b_in"] + r * (h @ p["w_hn"] + p["b_hn"]))
    h_new = (1.0 - z) * n + z * h
    logits = h_new @ p["w_out"] + p["b_out"]
    logp = jax.nn.log_softmax(logits, axis=1)
    return logp, h_new


if __name__ == "__main__":
    def run_case(hidden_size, output_size):
        key = jax.random.PRNGKey(0)
        k_param, k_tok, k_hid = jax.random.split(key, 3)

        params = init_params(k_param, hidden_size, output_size)
        kparams = prepare_params(params)   # fused / bf16 / lane-padded kernel layout

        token = jax.random.randint(k_tok, (1,), 0, output_size, dtype=jnp.int32)
        hidden = jax.random.uniform(k_hid, (1, hidden_size), jnp.float32, -1.0, 1.0)

        logp, h_new = decoder_forward(token, hidden, kparams, vocab_size=output_size)
        jax.block_until_ready((logp, h_new))

        ref_logp, ref_h = reference_forward(token, hidden, params)
        assert logp.shape == (1, output_size) and h_new.shape == (1, hidden_size)
        assert jnp.allclose(logp, ref_logp, atol=2e-2, rtol=2e-2), \
            float(jnp.max(jnp.abs(logp - ref_logp)))
        assert jnp.allclose(h_new, ref_h, atol=2e-2, rtol=2e-2), \
            float(jnp.max(jnp.abs(h_new - ref_h)))

    run_case(hidden_size=32, output_size=64)     # single vocab tile (nvt = 1)
    run_case(hidden_size=32, output_size=2500)   # tiled output projection (nvt = 2)
    print("KERNEL_OK")
</pallas_src>

<mosaic_0001>
module attributes {stable_mosaic.version = 11 : i64} {
  func.func @decoder_kernel(%arg0: i32, %arg1: memref<1xi32, #tpu.memory_space<smem>>, %arg2: memref<1x1x128xbf16, #tpu.memory_space<vmem>>, %arg3: memref<1x128xf32, #tpu.memory_space<vmem>>, %arg4: memref<128x384xbf16, #tpu.memory_space<vmem>>, %arg5: memref<128x384xbf16, #tpu.memory_space<vmem>>, %arg6: memref<4x128xf32, #tpu.memory_space<vmem>>, %arg7: memref<128x128xbf16, #tpu.memory_space<vmem>>, %arg8: memref<1x128xf32, #tpu.memory_space<vmem>>, %arg9: memref<1x1x128xf32, #tpu.memory_space<vmem>>, %arg10: memref<1x128xf32, #tpu.memory_space<vmem>>, %arg11: memref<1x128xf32, #tpu.memory_space<vmem>>, %arg12: memref<1x1xf32, #tpu.memory_space<vmem>>, %arg13: memref<1x1xf32, #tpu.memory_space<vmem>>) attributes {dimension_semantics = [#tpu.dimension_semantics<arbitrary>], iteration_bounds = array<i64: 1>, scalar_prefetch = 1 : i64, scratch_operands = 3 : i64, tpu.core_type = #tpu.core_type<tc>, window_params = [{transform_indices = @transform_0, window_bounds = array<i64: 1, 1, 128>}, {pipeline_mode = #tpu.pipeline_mode<synchronous>, transform_indices = @transform_1, window_bounds = array<i64: 1, 128>}, {pipeline_mode = #tpu.pipeline_mode<synchronous>, transform_indices = @transform_2, window_bounds = array<i64: 128, 384>}, {pipeline_mode = #tpu.pipeline_mode<synchronous>, transform_indices = @transform_3, window_bounds = array<i64: 128, 384>}, {pipeline_mode = #tpu.pipeline_mode<synchronous>, transform_indices = @transform_4, window_bounds = array<i64: 4, 128>}, {transform_indices = @transform_5, window_bounds = array<i64: 128, 128>}, {transform_indices = @transform_6, window_bounds = array<i64: 1, 128>}, {pipeline_mode = #tpu.pipeline_mode<synchronous>, transform_indices = @transform_7, window_bounds = array<i64: 1, 1, 128>}, {pipeline_mode = #tpu.pipeline_mode<synchronous>, transform_indices = @transform_8, window_bounds = array<i64: 1, 128>}]} {
    %c0_i32 = arith.constant 0 : i32
    %0 = arith.cmpi eq, %arg0, %c0_i32 : i32
    %1 = arith.extui %0 : i1 to i32
    %c0_i32_0 = arith.constant 0 : i32
    %2 = arith.cmpi ne, %1, %c0_i32_0 : i32
    scf.if %2 {
      %c0_20 = arith.constant 0 : index
      %c0_21 = arith.constant 0 : index
      %c0_22 = arith.constant 0 : index
      %32 = vector.load %arg2[%c0_20, %c0_21, %c0_22] : memref<1x1x128xbf16, #tpu.memory_space<vmem>>, vector<1x1x128xbf16>
      %33 = vector.shape_cast %32 : vector<1x1x128xbf16> to vector<1x128xbf16>
      %34 = arith.extf %33 : vector<1x128xbf16> to vector<1x128xf32>
      %cst_23 = arith.constant 0.000000e+00 : f32
      %35 = vector.broadcast %cst_23 : f32 to vector<1x128xf32>
      %36 = arith.maximumf %34, %35 : vector<1x128xf32>
      %c0_24 = arith.constant 0 : index
      %c0_25 = arith.constant 0 : index
      %37 = vector.load %arg3[%c0_24, %c0_25] : memref<1x128xf32, #tpu.memory_space<vmem>>, vector<1x128xf32>
      %38 = arith.truncf %36 : vector<1x128xf32> to vector<1x128xbf16>
      %c0_26 = arith.constant 0 : index
      %c0_27 = arith.constant 0 : index
      %39 = vector.load %arg4[%c0_26, %c0_27] : memref<128x384xbf16, #tpu.memory_space<vmem>>, vector<128x384xbf16>
      %cst_28 = arith.constant dense<0.000000e+00> : vector<1x384xf32>
      %40 = tpu.matmul %38, %39, %cst_28 {dimension_numbers = #tpu.dot_dimension_numbers<[1], [0], [0], [1], [0, 0, 1, 1], [], []>} : vector<1x128xbf16>, vector<128x384xbf16>, vector<1x384xf32> -> vector<1x384xf32>
      %41 = arith.truncf %37 : vector<1x128xf32> to vector<1x128xbf16>
      %c0_29 = arith.constant 0 : index
      %c0_30 = arith.constant 0 : index
      %42 = vector.load %arg5[%c0_29, %c0_30] : memref<128x384xbf16, #tpu.memory_space<vmem>>, vector<128x384xbf16>
      %cst_31 = arith.constant dense<0.000000e+00> : vector<1x384xf32>
      %43 = tpu.matmul %41, %42, %cst_31 {dimension_numbers = #tpu.dot_dimension_numbers<[1], [0], [0], [1], [0, 0, 1, 1], [], []>} : vector<1x128xbf16>, vector<128x384xbf16>, vector<1x384xf32> -> vector<1x384xf32>
      %c0_32 = arith.constant 0 : index
      %c0_33 = arith.constant 0 : index
      %44 = vector.load %arg6[%c0_32, %c0_33] : memref<4x128xf32, #tpu.memory_space<vmem>>, vector<4x128xf32>
      %45 = vector.extract_strided_slice %40 {offsets = [0, 0], sizes = [1, 128], strides = [1, 1]} : vector<1x384xf32> to vector<1x128xf32>
      %46 = vector.extract_strided_slice %43 {offsets = [0, 0], sizes = [1, 128], strides = [1, 1]} : vector<1x384xf32> to vector<1x128xf32>
      %47 = arith.addf %45, %46 : vector<1x128xf32>
      %48 = vector.extract_strided_slice %44 {offsets = [0, 0], sizes = [1, 128], strides = [1, 1]} : vector<4x128xf32> to vector<1x128xf32>
      %49 = arith.addf %47, %48 : vector<1x128xf32>
      %50 = arith.negf %49 : vector<1x128xf32>
      %51 = math.exp %50 : vector<1x128xf32>
      %cst_34 = arith.constant 1.000000e+00 : f32
      %52 = vector.broadcast %cst_34 : f32 to vector<1x128xf32>
      %53 = arith.addf %52, %51 : vector<1x128xf32>
      %54 = arith.divf %52, %53 : vector<1x128xf32>
      %55 = vector.extract_strided_slice %40 {offsets = [0, 128], sizes = [1, 128], strides = [1, 1]} : vector<1x384xf32> to vector<1x128xf32>
      %56 = vector.extract_strided_slice %43 {offsets = [0, 128], sizes = [1, 128], strides = [1, 1]} : vector<1x384xf32> to vector<1x128xf32>
      %57 = arith.addf %55, %56 : vector<1x128xf32>
      %58 = vector.extract_strided_slice %44 {offsets = [1, 0], sizes = [1, 128], strides = [1, 1]} : vector<4x128xf32> to vector<1x128xf32>
      %59 = arith.addf %57, %58 : vector<1x128xf32>
      %60 = arith.negf %59 : vector<1x128xf32>
      %61 = math.exp %60 : vector<1x128xf32>
      %cst_35 = arith.constant 1.000000e+00 : f32
      %62 = vector.broadcast %cst_35 : f32 to vector<1x128xf32>
      %63 = arith.addf %62, %61 : vector<1x128xf32>
      %64 = arith.divf %62, %63 : vector<1x128xf32>
      %65 = vector.extract_strided_slice %40 {offsets = [0, 256], sizes = [1, 128], strides = [1, 1]} : vector<1x384xf32> to vector<1x128xf32>
      %66 = vector.extract_strided_slice %44 {offsets = [2, 0], sizes = [1, 128], strides = [1, 1]} : vector<4x128xf32> to vector<1x128xf32>
      %67 = arith.addf %65, %66 : vector<1x128xf32>
      %68 = vector.extract_strided_slice %43 {offsets = [0, 256], sizes = [1, 128], strides = [1, 1]} : vector<1x384xf32> to vector<1x128xf32>
      %69 = vector.extract_strided_slice %44 {offsets = [3, 0], sizes = [1, 128], strides = [1, 1]} : vector<4x128xf32> to vector<1x128xf32>
      %70 = arith.addf %68, %69 : vector<1x128xf32>
      %71 = arith.mulf %54, %70 : vector<1x128xf32>
      %72 = arith.addf %67, %71 : vector<1x128xf32>
      %73 = math.tanh %72 : vector<1x128xf32>
      %cst_36 = arith.constant 1.000000e+00 : f32
      %74 = vector.broadcast %cst_36 : f32 to vector<1x128xf32>
      %75 = arith.subf %74, %64 : vector<1x128xf32>
      %76 = arith.mulf %75, %73 : vector<1x128xf32>
      %77 = arith.mulf %64, %37 : vector<1x128xf32>
      %78 = arith.addf %76, %77 : vector<1x128xf32>
      %c0_37 = arith.constant 0 : index
      %c0_38 = arith.constant 0 : index
      %79 = vector.load %arg11[%c0_37, %c0_38] : memref<1x128xf32, #tpu.memory_space<vmem>>, vector<1x128xf32>
      tpu.vector_store %arg11[%c0_37, %c0_38], %78 {strides = array<i32>} : memref<1x128xf32, #tpu.memory_space<vmem>>, vector<1x128xf32>,
      %c0_39 = arith.constant 0 : index
      %c0_40 = arith.constant 0 : index
      %80 = vector.load %arg10[%c0_39, %c0_40] : memref<1x128xf32, #tpu.memory_space<vmem>>, vector<1x128xf32>
      tpu.vector_store %arg10[%c0_39, %c0_40], %78 {strides = array<i32>} : memref<1x128xf32, #tpu.memory_space<vmem>>, vector<1x128xf32>,
      %cst_41 = arith.constant 0xFF800000 : f32
      %81 = vector.broadcast %cst_41 : f32 to vector<1x1xf32>
      %c0_42 = arith.constant 0 : index
      %c0_43 = arith.constant 0 : index
      %82 = vector.load %arg12[%c0_42, %c0_43] : memref<1x1xf32, #tpu.memory_space<vmem>>, vector<1x1xf32>
      tpu.vector_store %arg12[%c0_42, %c0_43], %81 {strides = array<i32>} : memref<1x1xf32, #tpu.memory_space<vmem>>, vector<1x1xf32>,
      %cst_44 = arith.constant 0.000000e+00 : f32
      %83 = vector.broadcast %cst_44 : f32 to vector<1x1xf32>
      %c0_45 = arith.constant 0 : index
      %c0_46 = arith.constant 0 : index
      %84 = vector.load %arg13[%c0_45, %c0_46] : memref<1x1xf32, #tpu.memory_space<vmem>>, vector<1x1xf32>
      tpu.vector_store %arg13[%c0_45, %c0_46], %83 {strides = array<i32>} : memref<1x1xf32, #tpu.memory_space<vmem>>, vector<1x1xf32>,
    } else {
    }
    %c0 = arith.constant 0 : index
    %c0_1 = arith.constant 0 : index
    %3 = vector.load %arg11[%c0, %c0_1] : memref<1x128xf32, #tpu.memory_space<vmem>>, vector<1x128xf32>
    %4 = arith.truncf %3 : vector<1x128xf32> to vector<1x128xbf16>
    %c0_2 = arith.constant 0 : index
    %c0_3 = arith.constant 0 : index
    %5 = vector.load %arg7[%c0_2, %c0_3] : memref<128x128xbf16, #tpu.memory_space<vmem>>, vector<128x128xbf16>
    %cst = arith.constant dense<0.000000e+00> : vector<1x128xf32>
    %6 = tpu.matmul %4, %5, %cst {dimension_numbers = #tpu.dot_dimension_numbers<[1], [0], [0], [1], [0, 0, 1, 1], [], []>} : vector<1x128xbf16>, vector<128x128xbf16>, vector<1x128xf32> -> vector<1x128xf32>
    %c0_4 = arith.constant 0 : index
    %c0_5 = arith.constant 0 : index
    %7 = vector.load %arg8[%c0_4, %c0_5] : memref<1x128xf32, #tpu.memory_space<vmem>>, vector<1x128xf32>
    %8 = arith.addf %6, %7 : vector<1x128xf32>
    %9 = arith.index_cast %arg0 : i32 to index
    %c0_6 = arith.constant 0 : index
    %c0_7 = arith.constant 0 : index
    %10 = vector.load %arg9[%9, %c0_6, %c0_7] : memref<1x1x128xf32, #tpu.memory_space<vmem>>, vector<1x1x128xf32>
    %11 = vector.shape_cast %10 : vector<1x1x128xf32> to vector<1x128xf32>
    %12 = vector.shape_cast %8 : vector<1x128xf32> to vector<1x1x128xf32>
    tpu.vector_store %arg9[%9, %c0_6, %c0_7], %12 {strides = array<i32>} : memref<1x1x128xf32, #tpu.memory_space<vmem>>, vector<1x1x128xf32>,
    %c0_8 = arith.constant 0 : index
    %c0_9 = arith.constant 0 : index
    %13 = vector.load %arg12[%c0_8, %c0_9] : memref<1x1xf32, #tpu.memory_space<vmem>>, vector<1x1xf32>
    %cst_10 = arith.constant dense<0xFF800000> : vector<1xf32>
    %14 = vector.multi_reduction <maximumf>, %8, %cst_10 [1] : vector<1x128xf32> to vector<1xf32>
    %15 = vector.shape_cast %14 : vector<1xf32> to vector<1x1xf32>
    %16 = arith.maximumf %13, %15 : vector<1x1xf32>
    %c0_11 = arith.constant 0 : index
    %c0_12 = arith.constant 0 : index
    %17 = vector.load %arg13[%c0_11, %c0_12] : memref<1x1xf32, #tpu.memory_space<vmem>>, vector<1x1xf32>
    %18 = arith.subf %13, %16 : vector<1x1xf32>
    %19 = math.exp %18 : vector<1x1xf32>
    %20 = arith.mulf %17, %19 : vector<1x1xf32>
    %21 = vector.broadcast %16 : vector<1x1xf32> to vector<1x128xf32>
    %22 = arith.subf %8, %21 : vector<1x128xf32>
    %23 = math.exp %22 : vector<1x128xf32>
    %cst_13 = arith.constant dense<0.000000e+00> : vector<1xf32>
    %24 = vector.multi_reduction <add>, %23, %cst_13 [1] : vector<1x128xf32> to vector<1xf32>
    %25 = vector.shape_cast %24 : vector<1xf32> to vector<1x1xf32>
    %26 = arith.addf %20, %25 : vector<1x1xf32>
    %c0_14 = arith.constant 0 : index
    %c0_15 = arith.constant 0 : index
    %27 = vector.load %arg13[%c0_14, %c0_15] : memref<1x1xf32, #tpu.memory_space<vmem>>, vector<1x1xf32>
    tpu.vector_store %arg13[%c0_14, %c0_15], %26 {strides = array<i32>} : memref<1x1xf32, #tpu.memory_space<vmem>>, vector<1x1xf32>,
    %c0_16 = arith.constant 0 : index
    %c0_17 = arith.constant 0 : index
    %28 = vector.load %arg12[%c0_16, %c0_17] : memref<1x1xf32, #tpu.memory_space<vmem>>, vector<1x1xf32>
    tpu.vector_store %arg12[%c0_16, %c0_17], %16 {strides = array<i32>} : memref<1x1xf32, #tpu.memory_space<vmem>>, vector<1x1xf32>,
    %c0_i32_18 = arith.constant 0 : i32
    %29 = arith.cmpi eq, %arg0, %c0_i32_18 : i32
    %30 = arith.extui %29 : i1 to i32
    %c0_i32_19 = arith.constant 0 : i32
    %31 = arith.cmpi ne, %30, %c0_i32_19 : i32
    scf.if %31 {
      %c0_20 = arith.constant 0 : index
      %c0_21 = arith.constant 0 : index
      %c0_22 = arith.constant 0 : index
      %32 = vector.load %arg9[%c0_20, %c0_21, %c0_22] : memref<1x1x128xf32, #tpu.memory_space<vmem>>, vector<1x1x128xf32>
      %c0_23 = arith.constant 0 : index
      %c0_24 = arith.constant 0 : index
      %33 = vector.load %arg12[%c0_23, %c0_24] : memref<1x1xf32, #tpu.memory_space<vmem>>, vector<1x1xf32>
      %34 = vector.shape_cast %33 : vector<1x1xf32> to vector<1x1x1xf32>
      %35 = vector.broadcast %34 : vector<1x1x1xf32> to vector<1x1x128xf32>
      %36 = arith.subf %32, %35 : vector<1x1x128xf32>
      %c0_25 = arith.constant 0 : index
      %c0_26 = arith.constant 0 : index
      %37 = vector.load %arg13[%c0_25, %c0_26] : memref<1x1xf32, #tpu.memory_space<vmem>>, vector<1x1xf32>
      %38 = math.log %37 : vector<1x1xf32>
      %39 = vector.shape_cast %38 : vector<1x1xf32> to vector<1x1x1xf32>
      %40 = vector.broadcast %39 : vector<1x1x1xf32> to vector<1x1x128xf32>
      %41 = arith.subf %36, %40 : vector<1x1x128xf32>
      %c0_27 = arith.constant 0 : index
      %c0_28 = arith.constant 0 : index
      %c0_29 = arith.constant 0 : index
      %42 = vector.load %arg9[%c0_27, %c0_28, %c0_29] : memref<1x1x128xf32, #tpu.memory_space<vmem>>, vector<1x1x128xf32>
      tpu.vector_store %arg9[%c0_27, %c0_28, %c0_29], %41 {strides = array<i32>} : memref<1x1x128xf32, #tpu.memory_space<vmem>>, vector<1x1x128xf32>,
    } else {
    }
    return
  }
  func.func @transform_0(%arg0: i32, %arg1: memref<1xi32, #tpu.memory_space<smem>>) -> (i32, i32, i32) {
    %c0 = arith.constant 0 : index
    %0 = memref.load %arg1[%c0] : memref<1xi32, #tpu.memory_space<smem>>
    %c0_i32 = arith.constant 0 : i32
    %c0_i32_0 = arith.constant 0 : i32
    %c0_i32_1 = arith.constant 0 : i32
    return %0, %c0_i32, %c0_i32_0 : i32, i32, i32
  }
  func.func @transform_1(%arg0: i32, %arg1: memref<1xi32, #tpu.memory_space<smem>>) -> (i32, i32) {
    %c0_i32 = arith.constant 0 : i32
    %c0_i32_0 = arith.constant 0 : i32
    %c0_i32_1 = arith.constant 0 : i32
    return %c0_i32, %c0_i32_0 : i32, i32
  }
  func.func @transform_2(%arg0: i32, %arg1: memref<1xi32, #tpu.memory_space<smem>>) -> (i32, i32) {
    %c0_i32 = arith.constant 0 : i32
    %c0_i32_0 = arith.constant 0 : i32
    %c0_i32_1 = arith.constant 0 : i32
    return %c0_i32, %c0_i32_0 : i32, i32
  }
  func.func @transform_3(%arg0: i32, %arg1: memref<1xi32, #tpu.memory_space<smem>>) -> (i32, i32) {
    %c0_i32 = arith.constant 0 : i32
    %c0_i32_0 = arith.constant 0 : i32
    %c0_i32_1 = arith.constant 0 : i32
    return %c0_i32, %c0_i32_0 : i32, i32
  }
  func.func @transform_4(%arg0: i32, %arg1: memref<1xi32, #tpu.memory_space<smem>>) -> (i32, i32) {
    %c0_i32 = arith.constant 0 : i32
    %c0_i32_0 = arith.constant 0 : i32
    %c0_i32_1 = arith.constant 0 : i32
    return %c0_i32, %c0_i32_0 : i32, i32
  }
  func.func @transform_5(%arg0: i32, %arg1: memref<1xi32, #tpu.memory_space<smem>>) -> (i32, i32) {
    %c0_i32 = arith.constant 0 : i32
    %c0_i32_0 = arith.constant 0 : i32
    return %c0_i32, %arg0 : i32, i32
  }
  func.func @transform_6(%arg0: i32, %arg1: memref<1xi32, #tpu.memory_space<smem>>) -> (i32, i32) {
    %c0_i32 = arith.constant 0 : i32
    %c0_i32_0 = arith.constant 0 : i32
    return %c0_i32, %arg0 : i32, i32
  }
  func.func @transform_7(%arg0: i32, %arg1: memref<1xi32, #tpu.memory_space<smem>>) -> (i32, i32, i32) {
    %c0_i32 = arith.constant 0 : i32
    %c0_i32_0 = arith.constant 0 : i32
    %c0_i32_1 = arith.constant 0 : i32
    %c0_i32_2 = arith.constant 0 : i32
    return %c0_i32, %c0_i32_0, %c0_i32_1 : i32, i32, i32
  }
  func.func @transform_8(%arg0: i32, %arg1: memref<1xi32, #tpu.memory_space<smem>>) -> (i32, i32) {
    %c0_i32 = arith.constant 0 : i32
    %c0_i32_0 = arith.constant 0 : i32
    %c0_i32_1 = arith.constant 0 : i32
    return %c0_i32, %c0_i32_0 : i32, i32
  }
}

</mosaic_0001>

<bundles_post_ra>
// kernel: decoder_forward.1
= control target key start
LH: loop header
LB: loop body
LE: loop exit
PB: predicated region body
PF: predicated region fallthrough
CT: control target
= control target key end

     0   :  { %16 = vsyncpa [#allocation8], 0  ;;  %s1298_s0 = inlined_call_operand.<no memory space> [shape: s32[1], index: 0, kind: input, shape index: {}]   ;;  %s1299_s1 = inlined_call_operand.vmem [shape: bf16[64,1,128], index: 1, kind: input, shape index: {}]   ;;  %s1300_s2 = inlined_call_operand.vmem [shape: f32[1,128], index: 2, kind: input, shape index: {}]   ;;  %s1301_s3 = inlined_call_operand.hbm [shape: bf16[128,384], index: 3, kind: input, shape index: {}]   ;;  %s1302_s4 = inlined_call_operand.hbm [shape: bf16[128,384], index: 4, kind: input, shape index: {}]   ;;  %s1303_s5 = inlined_call_operand.vmem [shape: f32[4,128], index: 5, kind: input, shape index: {}]   ;;  %s1304_s6 = inlined_call_operand.vmem [shape: bf16[128,128], index: 6, kind: input, shape index: {}]   ;;  %s1305_s7 = inlined_call_operand.vmem [shape: f32[1,128], index: 7, kind: input, shape index: {}]   ;;  %s1306_s8 = inlined_call_operand.hbm [shape: f32[1,1,128], index: 8, kind: output, shape index: {0}]   ;;  %s1307_s9 = inlined_call_operand.hbm [shape: f32[1,128], index: 9, kind: output, shape index: {1}]  }
   0x1   :  { %17 = vsyncpa [#allocation11], 0 }
   0x2   :  { %18 = vsyncpa [#allocation9], 0 }
   0x3   :  { %19 = vsyncpa [#allocation14], 0  ;;  %s1138_s30 = smov [#allocation7]  }
   0x4   :  { %s34_s10 = sshll.u32 %s1138_s30, 4  ;;  %s35_s10 = int_to_ptr.vmem [resolvable:$true] %s34_s10 }
   0x5   :  { %s1058_s11 = scalar_lea.vmem %s35_s10, 3072  ;;  %p1063_p1 = scmp.lt.s32.totalorder %s35_s10, %s35_s10 }
   0x6   :  { %p1059_p0 = scmp.ne.s32.totalorder %s35_s10, %s1058_s11  ;;  %p1064_p2 = scmp.lt.s32.totalorder %s1058_s11, %s1058_s11 }
   0x8   :  { %p1065_p3 = por %p1064_p2, %p1063_p1 }
   0xa   :  { %p1066_p4 = pnand %p1065_p3, %p1059_p0 }
   0xc   :  { %1069 = shalt.err (!%p1066_p4)
}
   0xd   :  { %s1139_s12 = smov 192   ;;  %s1140_s13 = smov 12  }
   0xe   :  { %40 = dma.hbm_to_vmem [thread:$0]  %s1301_s3, 3072, %s35_s10, [#allocation8], %s1139_s12, %s1139_s12, %s1140_s13  }
   0xf   :  { %s1141_s16 = smov [#allocation10]  }
  0x10   :  { %s46_s17 = sshll.u32 %s1141_s16, 4  ;;  %s47_s17 = int_to_ptr.vmem [resolvable:$true] %s46_s17 }
  0x11   :  { %s1078_s18 = scalar_lea.vmem %s47_s17, 3072  ;;  %p1083_p6 = scmp.lt.s32.totalorder %s47_s17, %s47_s17 }
  0x12   :  { %p1079_p5 = scmp.ne.s32.totalorder %s47_s17, %s1078_s18  ;;  %p1084_p7 = scmp.lt.s32.totalorder %s1078_s18, %s1078_s18 }
  0x14   :  { %p1085_p8 = por %p1084_p7, %p1083_p6 }
  0x16   :  { %p1086_p9 = pnand %p1085_p8, %p1079_p5 }
  0x18   :  { %1089 = shalt.err (!%p1086_p9)
}
  0x19   :  { %52 = dma.hbm_to_vmem [thread:$0]  %s1302_s4, 3072, %s47_s17, [#allocation11], %s1139_s12, %s1139_s12, %s1140_s13  }
  0x1a   :  { %1130 = dma.done.wait [#allocation8], 3072  }
  0x1b   :  { %1131 = vsyncadd [#allocation8], 4294964224 }
  0x1c   :  { %1132 = dma.done.wait [#allocation11], 3072  }
  0x1d   :  { %1133 = vsyncadd [#allocation11], 4294964224  ;;  %v1142_v0 = vmov 0.0   ;;  %v1143_v1 = vmov 0   ;;  %vm1144_vm0 = vmmov 0   ;;  %p70_p10 = scmp.lt.s32.totalorder %s1298_s0, 63 }
  0x1e   :  { %890 = vmatprep.subr.bf16.mxu1 %v1142_v0  ;;  %276 = vmatprep.mubr.bf16.mxu0 %v1143_v1  ;;  %v962_v2 = vld [vmem:[#allocation7 + $0xac] ss:$12 sps:$4 sm:$0xff]   ;;  %v964_v3 = vld [vmem:[#allocation7 + $0xa8] ss:$12 sps:$4 sm:$0xff]   ;;  %v967_v5 = vld [vmem:[#allocation7 + $0x90] ss:$12 sps:$4 sm:$0xff]  }
  0x1f   :  { %906 = vmatprep.mubr.msk.bf16.mxu1 %vm1144_vm0, %v1142_v0  ;;  %960 = vset.pattern.permute.xlu0 %v1143_v1  ;;  %v965_v4 = vld [vmem:[#allocation7 + $0x94] ss:$12 sps:$4 sm:$0xff]   ;;  %v968_v6 = vld [vmem:[#allocation7 + $0x7c] ss:$12 sps:$4 sm:$0xff]   ;;  %v970_v7 = vld [vmem:[#allocation7 + $0x78] ss:$12 sps:$4 sm:$0xff]  }
  0x20   :  { %961 = vset.pattern.permute.xlu1 %v1143_v1  ;;  %244 = vmatprep.subr.bf16.mxu0 %v962_v2  ;;  %v971_v8 = vld [vmem:[#allocation7 + $0x64] ss:$12 sps:$4 sm:$0xff]   ;;  %v973_v9 = vld [vmem:[#allocation7 + $0x60] ss:$12 sps:$4 sm:$0xff]   ;;  %s1309_s0 = smov (!%p70_p10, %s1298_s0), 63  ;;  %v1026_v56 = vld [vmem:[%s1304_s6 + $0x38] sm:$0xff]  }
  0x21   :  { %245 = vmatpush1.bf16.msra.mxu0 %v964_v3  ;;  %v986_v10 = vld [vmem:[#allocation7 + $0xb0] ss:$12 sps:$4 sm:$0xff]   ;;  %v974_v11 = vld [vmem:[#allocation7 + $0x4c] ss:$12 sps:$4 sm:$0xff]   ;;  %v976_v13 = vld [vmem:[#allocation7 + $0x48] ss:$12 sps:$4 sm:$0xff]   ;;  %s72_s25 = scalar_lea.vmem %s1299_s1, %s1309_s0 }
  0x22   :  { %246 = vmatprep.subr.bf16.mxu0 %v965_v4  ;;  %891 = vmatpush3.bf16.msra.mxu1 %v986_v10  ;;  %v990_v12 = vld [vmem:[#allocation7 + $0x98] ss:$12 sps:$4 sm:$0xff]   ;;  %v977_v14 = vld [vmem:[#allocation7 + $0x34] ss:$12 sps:$4 sm:$0xff]   ;;  %v979_v16 = vld [vmem:[#allocation7 + $0x30] ss:$12 sps:$4 sm:$0xff]  }
  0x23   :  { %892 = vmatprep.subr.bf16.mxu1 %v1142_v0  ;;  %v994_v15 = vld [vmem:[#allocation7 + $0x80] ss:$12 sps:$4 sm:$0xff]   ;;  %v79_v17 = vld [vmem:[%s72_s25] sm:$0x1]  ;;  %v998_v19 = vld [vmem:[#allocation7 + $0x68] ss:$12 sps:$4 sm:$0xff]  }
  0x24   :  { %v980_v18 = vld [vmem:[#allocation7 + $0x1c] ss:$12 sps:$4 sm:$0xff]   ;;  %v80_v20 = vunpack.c.l.bf16 %v79_v17  ;;  %v982_v21 = vld [vmem:[#allocation7 + $0x18] ss:$12 sps:$4 sm:$0xff]   ;;  %v985_v25 = vld [vmem:[#allocation7] ss:$12 sps:$4 sm:$0xff]  }
  0x25   :  { %247 = vmatpush1.bf16.msra.mxu0 %v967_v5  ;;  %v983_v22 = vld [vmem:[#allocation7 + $0x4] ss:$12 sps:$4 sm:$0xff]   ;;  %v989_v26 = vld [vmem:[#allocation10 + $0xac] ss:$12 sps:$4 sm:$0xff]   ;;  %v987_v29 = vld [vmem:[#allocation10 + $0xa8] ss:$12 sps:$4 sm:$0xff]  }
  0x26   :  { %248 = vmatprep.subr.bf16.mxu0 %v968_v6  ;;  %893 = vmatpush3.bf16.msra.mxu1 %v990_v12  ;;  %v1002_v23 = vld [vmem:[#allocation7 + $0x50] ss:$12 sps:$4 sm:$0xff]   ;;  %v81_v24 = vmax.f32 %v80_v20, 0.0  ;;  %v1006_v27 = vld [vmem:[#allocation7 + $0x38] ss:$12 sps:$4 sm:$0xff]   ;;  %vm602_vm1 = vcmask 0  }
  0x27   :  { %894 = vmatprep.subr.bf16.mxu1 %v1142_v0  ;;  %v993_v30 = vld [vmem:[#allocation10 + $0x94] ss:$12 sps:$4 sm:$0xff]   ;;  %v991_v32 = vld [vmem:[#allocation10 + $0x90] ss:$12 sps:$4 sm:$0xff]   ;;  %v995_v34 = vld [vmem:[#allocation10 + $0x78] ss:$12 sps:$4 sm:$0xff]  }
  0x28   :  { %v83_v28 = vpack.c.bf16 %v81_v24, %v81_v24  ;;  %v1010_v31 = vld [vmem:[#allocation7 + $0x20] ss:$12 sps:$4 sm:$0xff]   ;;  %v997_v33 = vld [vmem:[#allocation10 + $0x7c] ss:$12 sps:$4 sm:$0xff]   ;;  %v1001_v36 = vld [vmem:[#allocation10 + $0x64] ss:$12 sps:$4 sm:$0xff]  }
  0x29   :  { %249 = vmatpush1.bf16.msra.mxu0 %v970_v7  ;;  %v1014_v35 = vld [vmem:[#allocation7 + $0x8] ss:$12 sps:$4 sm:$0xff]   ;;  %v1018_v37 = vld [vmem:[#allocation10 + $0xb0] ss:$12 sps:$4 sm:$0xff]   ;;  %v999_v38 = vld [vmem:[#allocation10 + $0x60] ss:$12 sps:$4 sm:$0xff]  }
  0x2a   :  { %250 = vmatprep.subr.bf16.mxu0 %v971_v8  ;;  %895 = vmatpush3.bf16.msra.mxu1 %v994_v15  ;;  %v1005_v39 = vld [vmem:[#allocation10 + $0x4c] ss:$12 sps:$4 sm:$0xff]   ;;  %v1003_v41 = vld [vmem:[#allocation10 + $0x48] ss:$12 sps:$4 sm:$0xff]   ;;  %v1007_v44 = vld [vmem:[#allocation10 + $0x30] ss:$12 sps:$4 sm:$0xff]  }
  0x2b   :  { %896 = vmatprep.subr.bf16.mxu1 %v1142_v0  ;;  %v1019_v40 = vld [vmem:[#allocation10 + $0x98] ss:$12 sps:$4 sm:$0xff]   ;;  %v1009_v42 = vld [vmem:[#allocation10 + $0x34] ss:$12 sps:$4 sm:$0xff]   ;;  %v1013_v45 = vld [vmem:[#allocation10 + $0x1c] ss:$12 sps:$4 sm:$0xff]  }
  0x2c   :  { %v1020_v43 = vld [vmem:[#allocation10 + $0x80] ss:$12 sps:$4 sm:$0xff]   ;;  %v1021_v46 = vld [vmem:[#allocation10 + $0x68] ss:$12 sps:$4 sm:$0xff]   ;;  %v1011_v47 = vld [vmem:[#allocation10 + $0x18] ss:$12 sps:$4 sm:$0xff]  }
  0x2d   :  { %251 = vmatpush1.bf16.msra.mxu0 %v973_v9  ;;  %v1017_v48 = vld [vmem:[#allocation10 + $0x4] ss:$12 sps:$4 sm:$0xff]   ;;  %v1015_v50 = vld [vmem:[#allocation10] ss:$12 sps:$4 sm:$0xff]   ;;  %v1237_v51 = vld [vmem:[%s1300_s2] sm:$0x1] }
  0x2e   :  { %252 = vmatprep.subr.bf16.mxu0 %v974_v11  ;;  %897 = vmatpush3.bf16.msra.mxu1 %v998_v19  ;;  %v1022_v49 = vld [vmem:[#allocation10 + $0x50] ss:$12 sps:$4 sm:$0xff]   ;;  %v1023_v52 = vld [vmem:[#allocation10 + $0x38] ss:$12 sps:$4 sm:$0xff]   ;;  %v325_v53 = vpack.c.bf16 %v1237_v51, %v1237_v51  ;;  %v1024_v54 = vld [vmem:[#allocation10 + $0x20] ss:$12 sps:$4 sm:$0xff]  }
  0x2f   :  { %898 = vmatprep.subr.bf16.mxu1 %v1142_v0  ;;  %v1025_v55 = vld [vmem:[#allocation10 + $0x8] ss:$12 sps:$4 sm:$0xff]   ;;  %v1029_v59 = vld [vmem:[%s1304_s6 + $0x20] sm:$0xff]   ;;  %604 = vst.msk [vmem:[#allocation4] sm:$0x1] %vm602_vm1, %v1142_v0  ;;  %vm714_vm2 = vcmask 1040384  }
  0x30   :  { %v1027_v57 = vld [vmem:[%s1304_s6 + $0x30] sm:$0xff]   ;;  %v1028_v58 = vld [vmem:[%s1304_s6 + $0x28] sm:$0xff]   ;;  %v1030_v60 = vld [vmem:[%s1304_s6 + $0x18] sm:$0xff]  }
  0x31   :  { %253 = vmatpush1.bf16.msra.mxu0 %v976_v13  ;;  %v1031_v61 = vld [vmem:[%s1304_s6 + $0x10] sm:$0xff]   ;;  %v1032_v62 = vld [vmem:[%s1304_s6 + $0x8] sm:$0xff]   ;;  %v1033_v63 = vld [vmem:[%s1304_s6] sm:$0xff]  }
  0x32   :  { %254 = vmatprep.subr.bf16.mxu0 %v977_v14  ;;  %899 = vmatpush3.bf16.msra.mxu1 %v1002_v23  ;;  %v567_v9 = vld [vmem:[%s1303_s5] sm:$0xf] }
  0x33   :  { %900 = vmatprep.subr.bf16.mxu1 %v1142_v0  ;;  %v578_v17 = vrot.slane %v567_v9, 1 }
  0x35   :  { %255 = vmatpush1.bf16.msra.mxu0 %v979_v16 }
  0x36   :  { %256 = vmatprep.subr.bf16.mxu0 %v980_v18  ;;  %901 = vmatpush3.bf16.msra.mxu1 %v1006_v27  ;;  %v590_v27 = vrot.slane %v567_v9, 3 }
  0x37   :  { %902 = vmatprep.subr.bf16.mxu1 %v1142_v0 }
  0x39   :  { %257 = vmatpush1.bf16.msra.mxu0 %v982_v21 }
  0x3a   :  { %258 = vmatprep.subr.bf16.mxu0 %v983_v22  ;;  %903 = vmatpush3.bf16.msra.mxu1 %v1010_v31 }
  0x3b   :  { %904 = vmatprep.subr.bf16.mxu1 %v1142_v0 }
  0x3d   :  { %259 = vmatpush1.bf16.msra.mxu0 %v985_v25 }
  0x3e   :  { %486 = vmatprep.subr.bf16.mxu0 %v989_v26  ;;  %905 = vmatpush3.bf16.msra.mxu1 %v1014_v35 }
  0x3f   :  { %910 = vmatprep.subr.bf16.mxu1 %v1142_v0 }
  0x40   :  { %277 = vmatmul.mubr.bf16.vlgmr.msra.gmra.mxu0 %v83_v28 }
  0x41   :  { %487 = vmatpush1.bf16.msra.mxu0 %v987_v29  ;;  %518 = vmatprep.mubr.bf16.mxu0 %v1143_v1  ;;  %v587_v29 = vrot.slane %v567_v9, 2 }
  0x42   :  { %488 = vmatprep.subr.bf16.mxu0 %v993_v30  ;;  %907 = vmatmul.mubr.bf16.vlgmr.msra.gmra.mxu1 %v83_v28 }
  0x43   :  { %911 = vmatpush3.bf16.msra.mxu1 %v1018_v37  ;;  %926 = vmatprep.mubr.msk.bf16.mxu1 %vm1144_vm0, %v1142_v0 }
  0x44   :  { %912 = vmatprep.subr.bf16.mxu1 %v1142_v0 }
  0x45   :  { %489 = vmatpush1.bf16.msra.mxu0 %v991_v32 }
  0x46   :  { %490 = vmatprep.subr.bf16.mxu0 %v997_v33 }
  0x47   :  { %913 = vmatpush3.bf16.msra.mxu1 %v1019_v40 }
  0x48   :  { %914 = vmatprep.subr.bf16.mxu1 %v1142_v0 }
  0x49   :  { %491 = vmatpush1.bf16.msra.mxu0 %v995_v34 }
  0x4a   :  { %492 = vmatprep.subr.bf16.mxu0 %v1001_v36 }
  0x4b   :  { %915 = vmatpush3.bf16.msra.mxu1 %v1020_v43 }
  0x4c   :  { %916 = vmatprep.subr.bf16.mxu1 %v1142_v0 }
  0x4d   :  { %493 = vmatpush1.bf16.msra.mxu0 %v999_v38 }
  0x4e   :  { %494 = vmatprep.subr.bf16.mxu0 %v1005_v39 }
  0x4f   :  { %917 = vmatpush3.bf16.msra.mxu1 %v1021_v46 }
  0x50   :  { %918 = vmatprep.subr.bf16.mxu1 %v1142_v0 }
  0x51   :  { %495 = vmatpush1.bf16.msra.mxu0 %v1003_v41 }
  0x52   :  { %496 = vmatprep.subr.bf16.mxu0 %v1009_v42 }
  0x53   :  { %919 = vmatpush3.bf16.msra.mxu1 %v1022_v49 }
  0x54   :  { %920 = vmatprep.subr.bf16.mxu1 %v1142_v0 }
  0x55   :  { %497 = vmatpush1.bf16.msra.mxu0 %v1007_v44  ;;  %v1145_v44 = vmov -inf  }
  0x56   :  { %498 = vmatprep.subr.bf16.mxu0 %v1013_v45  ;;  %603 = vst.msk [vmem:[#allocation3] sm:$0x1] %vm602_vm1, %v1145_v44  ;;  %v623_v45 = vld [vmem:[%s1305_s7] sm:$0x1]  ;;  %s1146_s7 = smov [#allocation13]  }
  0x57   :  { %921 = vmatpush3.bf16.msra.mxu1 %v1023_v52  ;;  %s788_s4 = sshll.u32 %s1146_s7, 4  ;;  %s789_s4 = int_to_ptr.vmem [resolvable:$true] %s788_s4 }
  0x58   :  { %922 = vmatprep.subr.bf16.mxu1 %v1142_v0  ;;  %s1090_s21 = scalar_lea.vmem %s789_s4, 16  ;;  %s1094_s22 = scalar_lea.vmem %s789_s4, 32 }
  0x59   :  { %499 = vmatpush1.bf16.msra.mxu0 %v1011_v47  ;;  %p1091_p11 = scmp.ne.s32.totalorder %s789_s4, %s1090_s21  ;;  %p1095_p12 = scmp.lt.s32.totalorder %s789_s4, %s789_s4 }
  0x5a   :  { %500 = vmatprep.subr.bf16.mxu0 %v1017_v48  ;;  %p1096_p13 = scmp.lt.s32.totalorder %s1094_s22, %s1090_s21 }
  0x5b   :  { %923 = vmatpush3.bf16.msra.mxu1 %v1024_v54 }
  0x5c   :  { %924 = vmatprep.subr.bf16.mxu1 %v1142_v0  ;;  %p1097_p0 = por %p1096_p13, %p1095_p12 }
  0x5d   :  { %501 = vmatpush1.bf16.msra.mxu0 %v1015_v50  ;;  %v713_v52 = vld [vmem:[#allocation3] sm:$0x1] }
  0x5e   :  { %930 = vmatprep.subr.bf16.mxu0 %v1142_v0  ;;  %p1098_p1 = pnand %p1097_p0, %p1091_p11 }
  0x5f   :  { %925 = vmatpush3.bf16.msra.mxu1 %v1025_v55 }
  0x60   :  { %519 = vmatmul.mubr.bf16.vlgmr.msra.gmra.mxu0 %v325_v53 }
  0x61   :  { %946 = vmatprep.mubr.msk.bf16.mxu0 %vm1144_vm0, %v1142_v0  ;;  %931 = vmatpush3.bf16.msra.mxu0 %v1026_v56 }
  0x62   :  { %927 = vmatmul.mubr.bf16.vlgmr.msra.gmra.mxu1 %v325_v53  ;;  %932 = vmatprep.subr.bf16.mxu0 %v1142_v0 }
  0x65   :  { %933 = vmatpush3.bf16.msra.mxu0 %v1027_v57 }
  0x66   :  { %934 = vmatprep.subr.bf16.mxu0 %v1142_v0 }
  0x69   :  { %935 = vmatpush3.bf16.msra.mxu0 %v1028_v58 }
  0x6a   :  { %936 = vmatprep.subr.bf16.mxu0 %v1142_v0 }
  0x6d   :  { %937 = vmatpush3.bf16.msra.mxu0 %v1029_v59 }
  0x6e   :  { %938 = vmatprep.subr.bf16.mxu0 %v1142_v0 }
  0x71   :  { %939 = vmatpush3.bf16.msra.mxu0 %v1030_v60 }
  0x72   :  { %940 = vmatprep.subr.bf16.mxu0 %v1142_v0 }
  0x75   :  { %941 = vmatpush3.bf16.msra.mxu0 %v1031_v61 }
  0x76   :  { %942 = vmatprep.subr.bf16.mxu0 %v1142_v0 }
  0x79   :  { %943 = vmatpush3.bf16.msra.mxu0 %v1032_v62 }
  0x7a   :  { %944 = vmatprep.subr.bf16.mxu0 %v1142_v0  ;;  %v729_v0 = vlaneseq }
  0x7c   :  { %v730_v56 = vshrl.u32 %v729_v0, 7 }
  0x7d   :  { %945 = vmatpush3.bf16.msra.mxu0 %v1033_v63 }
  0x7e   :  { %v731_v57 = vsub.s32 0, %v730_v56 }
 0x100   :  { %v278_v1 = vpop.f32.mrf.mxu0 }
 0x102   :  { %v280_v2 = vpop.f32.mrf.mxu0  ;;  %v319_v5 = vpop.f32.mrf.mxu1 }
 0x103   :  { %v589_v33 = vadd.f32 %v587_v29, %v319_v5 }
 0x104   :  { %v282_v3 = vpop.f32.mrf.mxu0  ;;  %v908_v6 = vpop.f32.mrf.mxu1 }
 0x106   :  { %v283_v4 = vpop.f32.mrf.mxu0  ;;  %v322_v7 = vpop.f32.mrf.mxu1 }
 0x107   :  { %v719_v4 = vld [vmem:[#allocation4] sm:$0x1] }
 0x108   :  { %v909_v8 = vpop.f32.mrf.mxu1 }
 0x120   :  { %v520_v10 = vpop.f32.mrf.mxu0 }
 0x121   :  { %v568_v11 = vadd.f32 %v520_v10, %v278_v1 }
 0x122   :  { %v522_v12 = vpop.f32.mrf.mxu0  ;;  %v561_v20 = vpop.f32.mrf.mxu1 }
 0x123   :  { %v569_v13 = vadd.f32 %v568_v11, %v567_v9  ;;  %v576_v16 = vadd.f32 %v522_v12, %v280_v2  ;;  %v592_v31 = vadd.f32 %v590_v27, %v561_v20 }
 0x124   :  { %v524_v14 = vpop.f32.mrf.mxu0  ;;  %v928_v21 = vpop.f32.mrf.mxu1 }
 0x125   :  { %v853_v15 = vmul.f32 -1.442695, %v569_v13  ;;  %v580_v19 = vadd.f32 %v578_v17, %v576_v16 }
 0x126   :  { %v525_v18 = vpop.f32.mrf.mxu0  ;;  %v564_v23 = vpop.f32.mrf.mxu1 }
 0x127   :  { %1034 = vpow2.f32 %v853_v15  ;;  %v854_v22 = vmul.f32 -1.442695, %v580_v19 }
 0x128   :  { %v929_v24 = vpop.f32.mrf.mxu1 }
 0x129   :  { %1036 = vpow2.f32 %v854_v22 }
 0x134   :  { %v1035_v25 = vpop.eup %1034 }
 0x135   :  { %v573_v26 = vadd.f32 1.0, %v1035_v25 }
 0x136   :  { %v1037_v28 = vpop.eup %1036 }
 0x137   :  { %1038 = vrcp.f32 %v573_v26  ;;  %v584_v30 = vadd.f32 1.0, %v1037_v28 }
 0x139   :  { %1040 = vrcp.f32 %v584_v30 }
 0x144   :  { %v1039_v32 = vpop.eup %1038 }
 0x145   :  { %v593_v34 = vmul.f32 %v1039_v32, %v592_v31 }
 0x146   :  { %v1041_v36 = vpop.eup %1040 }
 0x147   :  { %v594_v35 = vadd.f32 %v593_v34, %v589_v33  ;;  %v596_v37 = vsub.f32 1.0, %v1041_v36  ;;  %v598_v39 = vmul.f32 %v1041_v36, %v1237_v51 }
 0x149   :  { %1042 = vtanh.f32 %v594_v35 }
 0x156   :  { %v1043_v38 = vpop.eup %1042 }
 0x157   :  { %v597_v40 = vmul.f32 %v1043_v38, %v596_v37 }
 0x159   :  { %v599_v41 = vadd.f32 %v598_v39, %v597_v40 }
 0x15b   :  { %600 = vst [vmem:[#allocation2] sm:$0x1] %v599_v41  ;;  %601 = vst [vmem:[#allocation13] sm:$0x1] %v599_v41 }
 0x162   :  { %v605_v42 = vld [vmem:[#allocation2] sm:$0x1] }
 0x163   :  { %v606_v43 = vpack.c.bf16 %v605_v42, %v605_v42 }
 0x165   :  { %947 = vmatmul.mubr.bf16.vlgmr.msra.gmra.mxu0 %v606_v43 }
 0x225   :  { %v706_v46 = vpop.f32.mrf.mxu0 }
 0x226   :  { %v707_v47 = vadd.f32 %v706_v46, %v623_v45 }
 0x227   :  { %v948_v48 = vpop.f32.mrf.mxu0 }
 0x228   :  { %712 = vst [vmem:[#allocation12] sm:$0x1] %v707_v47  ;;  %v715_v49 = vsel %vm714_vm2, %v707_v47, -inf }
 0x229   :  { %716 = vmax.xlane.f32.xlu0 %v715_v49  ;;  %v709_v50 = vpop.f32.mrf.mxu0 }
 0x22b   :  { %v949_v51 = vpop.f32.mrf.mxu0 }
 0x2b2   :  { %v717_v53 = vpop.xlane.xlu0 %716 }
 0x2b3   :  { %v718_v54 = vmax.f32 %v713_v52, %v717_v53 }
 0x2b5   :  { %v720_v55 = vsub.f32 %v713_v52, %v718_v54  ;;  %742 = vst.msk [vmem:[#allocation3] sm:$0x1] %vm602_vm1, %v718_v54  ;;  %726 = vperm.xlu0 %960, %v718_v54  }
 0x2b7   :  { %v721_v2 = vmul.f32 1.442695, %v720_v55 }
 0x2bc   :  { %v747_v1 = vld [vmem:[#allocation3] sm:$0x1] }
 0x330   :  { %v727_v58 = vpop.permute.xlu0 %726 }
 0x331   :  { %v732_v59 = vrot.slane %v727_v58, %v731_v57 }
 0x333   :  { %v733_v60 = vsub.f32 %v707_v47, %v732_v59 }
 0x335   :  { %v734_v61 = vmul.f32 1.442695, %v733_v60 }
 0x337   :  { %1044 = vpow2.f32 %v734_v61 }
 0x338   :  { %1046 = vpow2.f32 %v721_v2 }
 0x344   :  { %v1045_v62 = vpop.eup %1044 }
 0x345   :  { %v736_v63 = vsel %vm714_vm2, %v1045_v62, 0.0  ;;  %v1047_v3 = vpop.eup %1046 }
 0x346   :  { %737 = vadd.xlane.f32.xlu1 %v736_v63  ;;  %v723_v5 = vmul.f32 %v1047_v3, %v719_v4 }
 0x357   :  { %750 = vperm.xlu1 %961, %v747_v1  }
 0x3cf   :  { %v738_v6 = vpop.xlane.xlu1 %737 }
 0x3d0   :  { %v739_v7 = vadd.f32 %v738_v6, %v723_v5 }
 0x3d2   :  { %741 = vst.msk [vmem:[#allocation4] sm:$0x1] %vm602_vm1, %v739_v7 }
 0x3d9   :  { %v758_v8 = vld [vmem:[#allocation4] sm:$0x1] }
 0x3da   :  { %1048 = vlog2.f32 %v758_v8 }
 0x3e7   :  { %v1049_v9 = vpop.eup %1048 }
 0x3e8   :  { %v760_v10 = vmul.f32 0.6931472, %v1049_v9 }
 0x3ea   :  { %763 = vperm.xlu1 %961, %v760_v10  }
 0x3eb   :  { %1101 = shalt.err (!%p1098_p1)
}
 0x3ec   :  { %791 = dma.vmem_to_hbm [thread:$0]  %s789_s4, 16, %s1307_s9, [#allocation14]   ;;  %v751_v11 = vpop.permute.xlu1 %750  ;;  %v746_v13 = vld [vmem:[#allocation12] sm:$0x1] }
 0x3ed   :  { %v756_v12 = vrot.slane %v751_v11, %v731_v57  ;;  %s1147_s25 = smov [#allocation12]  }
 0x3ee   :  { %s778_s0 = sshll.u32 %s1147_s25, 4  ;;  %s779_s0 = int_to_ptr.vmem [resolvable:$true] %s778_s0 }
 0x3ef   :  { %v757_v15 = vsub.f32 %v746_v13, %v756_v12  ;;  %s1110_s1 = scalar_lea.vmem %s779_s0, 16  ;;  %s1114_s2 = scalar_lea.vmem %s779_s0, 32 }
 0x3f0   :  { %p1111_p2 = scmp.ne.s32.totalorder %s779_s0, %s1110_s1  ;;  %p1115_p3 = scmp.lt.s32.totalorder %s779_s0, %s779_s0 }
 0x3f1   :  { %p1116_p4 = scmp.lt.s32.totalorder %s1114_s2, %s1110_s1 }
 0x3f3   :  { %p1117_p5 = por %p1116_p4, %p1115_p3 }
 0x3f5   :  { %p1118_p6 = pnand %p1117_p5, %p1111_p2 }
 0x465   :  { %v764_v14 = vpop.permute.xlu1 %763 }
 0x466   :  { %v769_v16 = vrot.slane %v764_v14, %v731_v57 }
 0x468   :  { %v770_v17 = vsub.f32 %v757_v15, %v769_v16 }
 0x46a   :  { %771 = vst [vmem:[#allocation12] sm:$0x1] %v770_v17 }
 0x46b   :  { %1121 = shalt.err (!%p1118_p6)
}
 0x46c   :  { %781 = dma.vmem_to_hbm [thread:$0]  %s779_s0, 16, %s1306_s8, [#allocation9]  }
 0x46d   :  { %1134 = dma.done.wait [#allocation9], 16  }
 0x46e   :  { %1135 = vsyncadd [#allocation9], 4294967280 }
 0x46f   :  { %1136 = dma.done.wait [#allocation14], 16  }
 0x470   :  { %1137 = vsyncadd [#allocation14], 4294967280 }
 0x471   :  { %798 = vsyncpa [#allocation8], 1 }
 0x472   :  { %799 = vsyncpa [#allocation11], 1 }
 0x473   :  { %800 = vsyncpa [#allocation9], 1 }
 0x474   :  { %801 = vsyncpa [#allocation14], 1 }

</bundles_post_ra>
